<compile_context>
chip_gen: v7x
topology: tpu7x:2x2x1
jax: 0.10.0
libtpu: 0.0.40
codegen_flags: <defaults>
</compile_context>

<pallas_src>
import functools

import jax
import jax.numpy as jnp
from jax.experimental import pallas as pl
from jax.experimental.pallas import tpu as pltpu


def realnvp_kernel(z_ref, masks_ref, w1_ref, b1_ref, w2_ref, b2_ref,
                   w3s_ref, b3s_ref, w3t_ref, b3t_ref,
                   z_out_ref, ld_out_ref, *, num_flows):
    z = z_ref[...].astype(jnp.float32)          # (TB, dim)
    ld = jnp.zeros_like(z)                      # lane-dense log-det partial

    # Static unroll: num_flows is small and known at trace time; all params
    # are already VMEM-resident.
    for f in range(num_flows):
        mask = masks_ref[f]                     # (1, dim), values in {0, 1}
        keep = mask > 0.5                       # lanes that pass through

        z_masked = z * mask

        # s_t network: Linear -> ReLU -> Linear -> ReLU -> split Linear (MXU)
        h1 = jnp.maximum(
            jnp.dot(z_masked, w1_ref[f], preferred_element_type=jnp.float32)
            + b1_ref[f], 0.0)
        h2 = jnp.maximum(
            jnp.dot(h1, w2_ref[f], preferred_element_type=jnp.float32)
            + b2_ref[f], 0.0)
        s = jnp.tanh(
            jnp.dot(h2, w3s_ref[f], preferred_element_type=jnp.float32)
            + b3s_ref[f])
        t = (jnp.dot(h2, w3t_ref[f], preferred_element_type=jnp.float32)
             + b3t_ref[f])

        # z = z*mask + (1-mask)*(z*exp(s) + t)   (mask is 0/1 -> select)
        z = jnp.where(keep, z, z * jnp.exp(s) + t)
        # log_det += sum((1-mask)*s); reduction deferred to the wrapper.
        ld = ld + jnp.where(keep, 0.0, s)

    z_out_ref[...] = z
    ld_out_ref[...] = ld


def realnvp_forward(z, masks, w1, b1, w2, b2, w3, b3, *, batch_tile=None):
    """z: (B, dim) f32. masks: (num_flows, dim). w*: per-flow params stacked on
    a leading flow axis, weights already transposed to (in, out) for x @ W."""
    B, dim = z.shape
    num_flows, _, hidden = w1.shape

    # Pre-split the final linear so both halves of the output start at lane 0.
    w3s, w3t = w3[:, :, :dim], w3[:, :, dim:]
    b3s, b3t = b3[:, :dim], b3[:, dim:]

    # Reshape 1-D per-flow vectors to (num_flows, 1, X) so every BlockSpec's
    # trailing dims equal the full array extents (clean TPU tiling).
    masks_r = masks.reshape(num_flows, 1, dim)
    b1_r = b1.reshape(num_flows, 1, hidden)
    b2_r = b2.reshape(num_flows, 1, hidden)
    b3s_r = b3s.reshape(num_flows, 1, dim)
    b3t_r = b3t.reshape(num_flows, 1, dim)

    if batch_tile is None:
        batch_tile = B if B <= 256 else 256
    TB = batch_tile
    assert B % TB == 0  # TODO(synk): pad ragged batch tails if needed.
    grid = (B // TB,)

    # Parameters: a single block (constant index) -> resident across the grid,
    # no per-tile re-DMA.  (NOTE: at production widths, cast weights to bf16
    # here for v6e/v7x; irrelevant at dim=16 / hidden=32.)
    full = lambda b: (0, 0, 0)

    kernel = functools.partial(realnvp_kernel, num_flows=num_flows)

    z_out, ld_slab = pl.pallas_call(
        kernel,
        out_shape=(
            jax.ShapeDtypeStruct((B, dim), jnp.float32),
            jax.ShapeDtypeStruct((B, dim), jnp.float32),
        ),
        grid_spec=pltpu.PrefetchScalarGridSpec(
            num_scalar_prefetch=0,
            grid=grid,
            in_specs=[
                pl.BlockSpec((TB, dim), lambda b: (b, 0)),           # z
                pl.BlockSpec((num_flows, 1, dim), full),             # masks
                pl.BlockSpec((num_flows, dim, hidden), full),        # W1
                pl.BlockSpec((num_flows, 1, hidden), full),          # b1
                pl.BlockSpec((num_flows, hidden, hidden), full),     # W2
                pl.BlockSpec((num_flows, 1, hidden), full),          # b2
                pl.BlockSpec((num_flows, hidden, dim), full),        # W3_s
                pl.BlockSpec((num_flows, 1, dim), full),             # b3_s
                pl.BlockSpec((num_flows, hidden, dim), full),        # W3_t
                pl.BlockSpec((num_flows, 1, dim), full),             # b3_t
            ],
            out_specs=[
                pl.BlockSpec((TB, dim), lambda b: (b, 0)),           # z_out
                pl.BlockSpec((TB, dim), lambda b: (b, 0)),           # ld slab
            ],
        ),
        compiler_params=pltpu.CompilerParams(
            dimension_semantics=("parallel",)),      # batch tiles independent
    )(z, masks_r, w1, b1_r, w2, b2_r, w3s, b3s_r, w3t, b3t_r)

    # Single cross-lane reduction (instead of one masked (B,1) store per flow).
    return z_out, jnp.sum(ld_slab, axis=1)


def make_params(key, dim, hidden, num_flows):
    """Deterministic synthetic parameters (PyTorch-Linear style uniform init).
    Weights stored transposed: (in_features, out_features)."""
    def linear(k, fan_in, fan_out):
        kw, kb = jax.random.split(k)
        bound = 1.0 / jnp.sqrt(fan_in)
        w = jax.random.uniform(kw, (fan_in, fan_out), jnp.float32, -bound, bound)
        b = jax.random.uniform(kb, (fan_out,), jnp.float32, -bound, bound)
        return w, b

    w1s, b1s, w2s, b2s, w3s, b3s, masks = [], [], [], [], [], [], []
    keys = jax.random.split(key, num_flows * 3)
    for i in range(num_flows):
        k1, k2, k3 = keys[3 * i], keys[3 * i + 1], keys[3 * i + 2]
        w1, b1 = linear(k1, dim, hidden)
        w2, b2 = linear(k2, hidden, hidden)
        w3, b3 = linear(k3, hidden, 2 * dim)
        w1s.append(w1); b1s.append(b1)
        w2s.append(w2); b2s.append(b2)
        w3s.append(w3); b3s.append(b3)
        mask = jnp.zeros((dim,), jnp.float32).at[i % 2::2].set(1.0)
        masks.append(mask)

    return (jnp.stack(masks), jnp.stack(w1s), jnp.stack(b1s),
            jnp.stack(w2s), jnp.stack(b2s), jnp.stack(w3s), jnp.stack(b3s))


def realnvp_reference(z, masks, w1, b1, w2, b2, w3, b3):
    """Pure-JAX reference mirroring the PyTorch forward."""
    B, dim = z.shape
    log_det = jnp.zeros((B,), jnp.float32)
    for i in range(w1.shape[0]):
        mask = masks[i]
        z_masked = z * mask
        h1 = jnp.maximum(z_masked @ w1[i] + b1[i], 0.0)
        h2 = jnp.maximum(h1 @ w2[i] + b2[i], 0.0)
        st = h2 @ w3[i] + b3[i]
        s = jnp.tanh(st[:, :dim])
        t = st[:, dim:]
        z = z_masked + (1.0 - mask) * (z * jnp.exp(s) + t)
        log_det = log_det + jnp.sum((1.0 - mask) * s, axis=1)
    return z, log_det


if __name__ == "__main__":
    B, dim, hidden, num_flows = 8, 16, 32, 4

    key = jax.random.PRNGKey(0)
    kz, kp = jax.random.split(key)
    z = jax.random.normal(kz, (B, dim), jnp.float32)
    masks, w1, b1, w2, b2, w3, b3 = make_params(kp, dim, hidden, num_flows)

    z_out, log_det = realnvp_forward(z, masks, w1, b1, w2, b2, w3, b3)
    jax.block_until_ready((z_out, log_det))

    z_ref, ld_ref = realnvp_reference(z, masks, w1, b1, w2, b2, w3, b3)
    assert jnp.allclose(z_out, z_ref, atol=1e-5, rtol=1e-5)
    assert jnp.allclose(log_det, ld_ref, atol=1e-5, rtol=1e-5)

    print("KERNEL_OK")
</pallas_src>

<mosaic_0001>
module attributes {stable_mosaic.version = 11 : i64} {
  func.func @realnvp_kernel(%arg0: i32, %arg1: memref<8x16xf32, #tpu.memory_space<vmem>>, %arg2: memref<4x1x16xf32, #tpu.memory_space<vmem>>, %arg3: memref<4x16x32xf32, #tpu.memory_space<vmem>>, %arg4: memref<4x1x32xf32, #tpu.memory_space<vmem>>, %arg5: memref<4x32x32xf32, #tpu.memory_space<vmem>>, %arg6: memref<4x1x32xf32, #tpu.memory_space<vmem>>, %arg7: memref<4x32x16xf32, #tpu.memory_space<vmem>>, %arg8: memref<4x1x16xf32, #tpu.memory_space<vmem>>, %arg9: memref<4x32x16xf32, #tpu.memory_space<vmem>>, %arg10: memref<4x1x16xf32, #tpu.memory_space<vmem>>, %arg11: memref<8x16xf32, #tpu.memory_space<vmem>>, %arg12: memref<8x16xf32, #tpu.memory_space<vmem>>) attributes {dimension_semantics = [#tpu.dimension_semantics<parallel>], iteration_bounds = array<i64: 1>, scalar_prefetch = 0 : i64, scratch_operands = 0 : i64, tpu.core_type = #tpu.core_type<tc>, window_params = [{transform_indices = @transform_0, window_bounds = array<i64: 8, 16>}, {pipeline_mode = #tpu.pipeline_mode<synchronous>, transform_indices = @transform_1, window_bounds = array<i64: 4, 1, 16>}, {pipeline_mode = #tpu.pipeline_mode<synchronous>, transform_indices = @transform_2, window_bounds = array<i64: 4, 16, 32>}, {pipeline_mode = #tpu.pipeline_mode<synchronous>, transform_indices = @transform_3, window_bounds = array<i64: 4, 1, 32>}, {pipeline_mode = #tpu.pipeline_mode<synchronous>, transform_indices = @transform_4, window_bounds = array<i64: 4, 32, 32>}, {pipeline_mode = #tpu.pipeline_mode<synchronous>, transform_indices = @transform_5, window_bounds = array<i64: 4, 1, 32>}, {pipeline_mode = #tpu.pipeline_mode<synchronous>, transform_indices = @transform_6, window_bounds = array<i64: 4, 32, 16>}, {pipeline_mode = #tpu.pipeline_mode<synchronous>, transform_indices = @transform_7, window_bounds = array<i64: 4, 1, 16>}, {pipeline_mode = #tpu.pipeline_mode<synchronous>, transform_indices = @transform_8, window_bounds = array<i64: 4, 32, 16>}, {pipeline_mode = #tpu.pipeline_mode<synchronous>, transform_indices = @transform_9, window_bounds = array<i64: 4, 1, 16>}, {transform_indices = @transform_10, window_bounds = array<i64: 8, 16>}, {transform_indices = @transform_11, window_bounds = array<i64: 8, 16>}]} {
    %c0 = arith.constant 0 : index
    %c0_0 = arith.constant 0 : index
    %0 = vector.load %arg1[%c0, %c0_0] : memref<8x16xf32, #tpu.memory_space<vmem>>, vector<8x16xf32>
    %cst = arith.constant 0.000000e+00 : f32
    %1 = vector.broadcast %cst : f32 to vector<8x16xf32>
    %c0_1 = arith.constant 0 : index
    %c0_2 = arith.constant 0 : index
    %c0_3 = arith.constant 0 : index
    %2 = vector.load %arg2[%c0_1, %c0_2, %c0_3] : memref<4x1x16xf32, #tpu.memory_space<vmem>>, vector<1x1x16xf32>
    %3 = vector.shape_cast %2 : vector<1x1x16xf32> to vector<1x16xf32>
    %cst_4 = arith.constant 5.000000e-01 : f32
    %4 = vector.broadcast %cst_4 : f32 to vector<1x16xf32>
    %5 = arith.cmpf ogt, %3, %4 : vector<1x16xf32>
    %6 = vector.broadcast %3 : vector<1x16xf32> to vector<8x16xf32>
    %7 = arith.mulf %0, %6 : vector<8x16xf32>
    %c0_5 = arith.constant 0 : index
    %c0_6 = arith.constant 0 : index
    %c0_7 = arith.constant 0 : index
    %8 = vector.load %arg3[%c0_5, %c0_6, %c0_7] : memref<4x16x32xf32, #tpu.memory_space<vmem>>, vector<1x16x32xf32>
    %9 = vector.shape_cast %8 : vector<1x16x32xf32> to vector<16x32xf32>
    %cst_8 = arith.constant dense<0.000000e+00> : vector<8x32xf32>
    %10 = tpu.matmul %7, %9, %cst_8 {dimension_numbers = #tpu.dot_dimension_numbers<[1], [0], [0], [1], [0, 0, 1, 1], [], []>} : vector<8x16xf32>, vector<16x32xf32>, vector<8x32xf32> -> vector<8x32xf32>
    %c0_9 = arith.constant 0 : index
    %c0_10 = arith.constant 0 : index
    %c0_11 = arith.constant 0 : index
    %11 = vector.load %arg4[%c0_9, %c0_10, %c0_11] : memref<4x1x32xf32, #tpu.memory_space<vmem>>, vector<1x1x32xf32>
    %12 = vector.shape_cast %11 : vector<1x1x32xf32> to vector<1x32xf32>
    %13 = vector.broadcast %12 : vector<1x32xf32> to vector<8x32xf32>
    %14 = arith.addf %10, %13 : vector<8x32xf32>
    %cst_12 = arith.constant 0.000000e+00 : f32
    %15 = vector.broadcast %cst_12 : f32 to vector<8x32xf32>
    %16 = arith.maximumf %14, %15 : vector<8x32xf32>
    %c0_13 = arith.constant 0 : index
    %c0_14 = arith.constant 0 : index
    %c0_15 = arith.constant 0 : index
    %17 = vector.load %arg5[%c0_13, %c0_14, %c0_15] : memref<4x32x32xf32, #tpu.memory_space<vmem>>, vector<1x32x32xf32>
    %18 = vector.shape_cast %17 : vector<1x32x32xf32> to vector<32x32xf32>
    %cst_16 = arith.constant dense<0.000000e+00> : vector<8x32xf32>
    %19 = tpu.matmul %16, %18, %cst_16 {dimension_numbers = #tpu.dot_dimension_numbers<[1], [0], [0], [1], [0, 0, 1, 1], [], []>} : vector<8x32xf32>, vector<32x32xf32>, vector<8x32xf32> -> vector<8x32xf32>
    %c0_17 = arith.constant 0 : index
    %c0_18 = arith.constant 0 : index
    %c0_19 = arith.constant 0 : index
    %20 = vector.load %arg6[%c0_17, %c0_18, %c0_19] : memref<4x1x32xf32, #tpu.memory_space<vmem>>, vector<1x1x32xf32>
    %21 = vector.shape_cast %20 : vector<1x1x32xf32> to vector<1x32xf32>
    %22 = vector.broadcast %21 : vector<1x32xf32> to vector<8x32xf32>
    %23 = arith.addf %19, %22 : vector<8x32xf32>
    %cst_20 = arith.constant 0.000000e+00 : f32
    %24 = vector.broadcast %cst_20 : f32 to vector<8x32xf32>
    %25 = arith.maximumf %23, %24 : vector<8x32xf32>
    %c0_21 = arith.constant 0 : index
    %c0_22 = arith.constant 0 : index
    %c0_23 = arith.constant 0 : index
    %26 = vector.load %arg7[%c0_21, %c0_22, %c0_23] : memref<4x32x16xf32, #tpu.memory_space<vmem>>, vector<1x32x16xf32>
    %27 = vector.shape_cast %26 : vector<1x32x16xf32> to vector<32x16xf32>
    %cst_24 = arith.constant dense<0.000000e+00> : vector<8x16xf32>
    %28 = tpu.matmul %25, %27, %cst_24 {dimension_numbers = #tpu.dot_dimension_numbers<[1], [0], [0], [1], [0, 0, 1, 1], [], []>} : vector<8x32xf32>, vector<32x16xf32>, vector<8x16xf32> -> vector<8x16xf32>
    %c0_25 = arith.constant 0 : index
    %c0_26 = arith.constant 0 : index
    %c0_27 = arith.constant 0 : index
    %29 = vector.load %arg8[%c0_25, %c0_26, %c0_27] : memref<4x1x16xf32, #tpu.memory_space<vmem>>, vector<1x1x16xf32>
    %30 = vector.shape_cast %29 : vector<1x1x16xf32> to vector<1x16xf32>
    %31 = vector.broadcast %30 : vector<1x16xf32> to vector<8x16xf32>
    %32 = arith.addf %28, %31 : vector<8x16xf32>
    %33 = math.tanh %32 : vector<8x16xf32>
    %c0_28 = arith.constant 0 : index
    %c0_29 = arith.constant 0 : index
    %c0_30 = arith.constant 0 : index
    %34 = vector.load %arg9[%c0_28, %c0_29, %c0_30] : memref<4x32x16xf32, #tpu.memory_space<vmem>>, vector<1x32x16xf32>
    %35 = vector.shape_cast %34 : vector<1x32x16xf32> to vector<32x16xf32>
    %cst_31 = arith.constant dense<0.000000e+00> : vector<8x16xf32>
    %36 = tpu.matmul %25, %35, %cst_31 {dimension_numbers = #tpu.dot_dimension_numbers<[1], [0], [0], [1], [0, 0, 1, 1], [], []>} : vector<8x32xf32>, vector<32x16xf32>, vector<8x16xf32> -> vector<8x16xf32>
    %c0_32 = arith.constant 0 : index
    %c0_33 = arith.constant 0 : index
    %c0_34 = arith.constant 0 : index
    %37 = vector.load %arg10[%c0_32, %c0_33, %c0_34] : memref<4x1x16xf32, #tpu.memory_space<vmem>>, vector<1x1x16xf32>
    %38 = vector.shape_cast %37 : vector<1x1x16xf32> to vector<1x16xf32>
    %39 = vector.broadcast %38 : vector<1x16xf32> to vector<8x16xf32>
    %40 = arith.addf %36, %39 : vector<8x16xf32>
    %41 = math.exp %33 : vector<8x16xf32>
    %42 = arith.mulf %0, %41 : vector<8x16xf32>
    %43 = arith.addf %42, %40 : vector<8x16xf32>
    %44 = vector.shape_cast %5 : vector<1x16xi1> to vector<1x16xi1>
    %45 = vector.broadcast %44 : vector<1x16xi1> to vector<8x16xi1>
    %46 = arith.select %45, %0, %43 : vector<8x16xi1>, vector<8x16xf32>
    %cst_35 = arith.constant 0.000000e+00 : f32
    %47 = vector.shape_cast %5 : vector<1x16xi1> to vector<1x16xi1>
    %48 = vector.broadcast %47 : vector<1x16xi1> to vector<8x16xi1>
    %49 = vector.broadcast %cst_35 : f32 to vector<8x16xf32>
    %50 = arith.select %48, %49, %33 : vector<8x16xi1>, vector<8x16xf32>
    %51 = arith.addf %1, %50 : vector<8x16xf32>
    %c1 = arith.constant 1 : index
    %c0_36 = arith.constant 0 : index
    %c0_37 = arith.constant 0 : index
    %52 = vector.load %arg2[%c1, %c0_36, %c0_37] : memref<4x1x16xf32, #tpu.memory_space<vmem>>, vector<1x1x16xf32>
    %53 = vector.shape_cast %52 : vector<1x1x16xf32> to vector<1x16xf32>
    %cst_38 = arith.constant 5.000000e-01 : f32
    %54 = vector.broadcast %cst_38 : f32 to vector<1x16xf32>
    %55 = arith.cmpf ogt, %53, %54 : vector<1x16xf32>
    %56 = vector.broadcast %53 : vector<1x16xf32> to vector<8x16xf32>
    %57 = arith.mulf %46, %56 : vector<8x16xf32>
    %c1_39 = arith.constant 1 : index
    %c0_40 = arith.constant 0 : index
    %c0_41 = arith.constant 0 : index
    %58 = vector.load %arg3[%c1_39, %c0_40, %c0_41] : memref<4x16x32xf32, #tpu.memory_space<vmem>>, vector<1x16x32xf32>
    %59 = vector.shape_cast %58 : vector<1x16x32xf32> to vector<16x32xf32>
    %cst_42 = arith.constant dense<0.000000e+00> : vector<8x32xf32>
    %60 = tpu.matmul %57, %59, %cst_42 {dimension_numbers = #tpu.dot_dimension_numbers<[1], [0], [0], [1], [0, 0, 1, 1], [], []>} : vector<8x16xf32>, vector<16x32xf32>, vector<8x32xf32> -> vector<8x32xf32>
    %c1_43 = arith.constant 1 : index
    %c0_44 = arith.constant 0 : index
    %c0_45 = arith.constant 0 : index
    %61 = vector.load %arg4[%c1_43, %c0_44, %c0_45] : memref<4x1x32xf32, #tpu.memory_space<vmem>>, vector<1x1x32xf32>
    %62 = vector.shape_cast %61 : vector<1x1x32xf32> to vector<1x32xf32>
    %63 = vector.broadcast %62 : vector<1x32xf32> to vector<8x32xf32>
    %64 = arith.addf %60, %63 : vector<8x32xf32>
    %cst_46 = arith.constant 0.000000e+00 : f32
    %65 = vector.broadcast %cst_46 : f32 to vector<8x32xf32>
    %66 = arith.maximumf %64, %65 : vector<8x32xf32>
    %c1_47 = arith.constant 1 : index
    %c0_48 = arith.constant 0 : index
    %c0_49 = arith.constant 0 : index
    %67 = vector.load %arg5[%c1_47, %c0_48, %c0_49] : memref<4x32x32xf32, #tpu.memory_space<vmem>>, vector<1x32x32xf32>
    %68 = vector.shape_cast %67 : vector<1x32x32xf32> to vector<32x32xf32>
    %cst_50 = arith.constant dense<0.000000e+00> : vector<8x32xf32>
    %69 = tpu.matmul %66, %68, %cst_50 {dimension_numbers = #tpu.dot_dimension_numbers<[1], [0], [0], [1], [0, 0, 1, 1], [], []>} : vector<8x32xf32>, vector<32x32xf32>, vector<8x32xf32> -> vector<8x32xf32>
    %c1_51 = arith.constant 1 : index
    %c0_52 = arith.constant 0 : index
    %c0_53 = arith.constant 0 : index
    %70 = vector.load %arg6[%c1_51, %c0_52, %c0_53] : memref<4x1x32xf32, #tpu.memory_space<vmem>>, vector<1x1x32xf32>
    %71 = vector.shape_cast %70 : vector<1x1x32xf32> to vector<1x32xf32>
    %72 = vector.broadcast %71 : vector<1x32xf32> to vector<8x32xf32>
    %73 = arith.addf %69, %72 : vector<8x32xf32>
    %cst_54 = arith.constant 0.000000e+00 : f32
    %74 = vector.broadcast %cst_54 : f32 to vector<8x32xf32>
    %75 = arith.maximumf %73, %74 : vector<8x32xf32>
    %c1_55 = arith.constant 1 : index
    %c0_56 = arith.constant 0 : index
    %c0_57 = arith.constant 0 : index
    %76 = vector.load %arg7[%c1_55, %c0_56, %c0_57] : memref<4x32x16xf32, #tpu.memory_space<vmem>>, vector<1x32x16xf32>
    %77 = vector.shape_cast %76 : vector<1x32x16xf32> to vector<32x16xf32>
    %cst_58 = arith.constant dense<0.000000e+00> : vector<8x16xf32>
    %78 = tpu.matmul %75, %77, %cst_58 {dimension_numbers = #tpu.dot_dimension_numbers<[1], [0], [0], [1], [0, 0, 1, 1], [], []>} : vector<8x32xf32>, vector<32x16xf32>, vector<8x16xf32> -> vector<8x16xf32>
    %c1_59 = arith.constant 1 : index
    %c0_60 = arith.constant 0 : index
    %c0_61 = arith.constant 0 : index
    %79 = vector.load %arg8[%c1_59, %c0_60, %c0_61] : memref<4x1x16xf32, #tpu.memory_space<vmem>>, vector<1x1x16xf32>
    %80 = vector.shape_cast %79 : vector<1x1x16xf32> to vector<1x16xf32>
    %81 = vector.broadcast %80 : vector<1x16xf32> to vector<8x16xf32>
    %82 = arith.addf %78, %81 : vector<8x16xf32>
    %83 = math.tanh %82 : vector<8x16xf32>
    %c1_62 = arith.constant 1 : index
    %c0_63 = arith.constant 0 : index
    %c0_64 = arith.constant 0 : index
    %84 = vector.load %arg9[%c1_62, %c0_63, %c0_64] : memref<4x32x16xf32, #tpu.memory_space<vmem>>, vector<1x32x16xf32>
    %85 = vector.shape_cast %84 : vector<1x32x16xf32> to vector<32x16xf32>
    %cst_65 = arith.constant dense<0.000000e+00> : vector<8x16xf32>
    %86 = tpu.matmul %75, %85, %cst_65 {dimension_numbers = #tpu.dot_dimension_numbers<[1], [0], [0], [1], [0, 0, 1, 1], [], []>} : vector<8x32xf32>, vector<32x16xf32>, vector<8x16xf32> -> vector<8x16xf32>
    %c1_66 = arith.constant 1 : index
    %c0_67 = arith.constant 0 : index
    %c0_68 = arith.constant 0 : index
    %87 = vector.load %arg10[%c1_66, %c0_67, %c0_68] : memref<4x1x16xf32, #tpu.memory_space<vmem>>, vector<1x1x16xf32>
    %88 = vector.shape_cast %87 : vector<1x1x16xf32> to vector<1x16xf32>
    %89 = vector.broadcast %88 : vector<1x16xf32> to vector<8x16xf32>
    %90 = arith.addf %86, %89 : vector<8x16xf32>
    %91 = math.exp %83 : vector<8x16xf32>
    %92 = arith.mulf %46, %91 : vector<8x16xf32>
    %93 = arith.addf %92, %90 : vector<8x16xf32>
    %94 = vector.shape_cast %55 : vector<1x16xi1> to vector<1x16xi1>
    %95 = vector.broadcast %94 : vector<1x16xi1> to vector<8x16xi1>
    %96 = arith.select %95, %46, %93 : vector<8x16xi1>, vector<8x16xf32>
    %cst_69 = arith.constant 0.000000e+00 : f32
    %97 = vector.shape_cast %55 : vector<1x16xi1> to vector<1x16xi1>
    %98 = vector.broadcast %97 : vector<1x16xi1> to vector<8x16xi1>
    %99 = vector.broadcast %cst_69 : f32 to vector<8x16xf32>
    %100 = arith.select %98, %99, %83 : vector<8x16xi1>, vector<8x16xf32>
    %101 = arith.addf %51, %100 : vector<8x16xf32>
    %c2 = arith.constant 2 : index
    %c0_70 = arith.constant 0 : index
    %c0_71 = arith.constant 0 : index
    %102 = vector.load %arg2[%c2, %c0_70, %c0_71] : memref<4x1x16xf32, #tpu.memory_space<vmem>>, vector<1x1x16xf32>
    %103 = vector.shape_cast %102 : vector<1x1x16xf32> to vector<1x16xf32>
    %cst_72 = arith.constant 5.000000e-01 : f32
    %104 = vector.broadcast %cst_72 : f32 to vector<1x16xf32>
    %105 = arith.cmpf ogt, %103, %104 : vector<1x16xf32>
    %106 = vector.broadcast %103 : vector<1x16xf32> to vector<8x16xf32>
    %107 = arith.mulf %96, %106 : vector<8x16xf32>
    %c2_73 = arith.constant 2 : index
    %c0_74 = arith.constant 0 : index
    %c0_75 = arith.constant 0 : index
    %108 = vector.load %arg3[%c2_73, %c0_74, %c0_75] : memref<4x16x32xf32, #tpu.memory_space<vmem>>, vector<1x16x32xf32>
    %109 = vector.shape_cast %108 : vector<1x16x32xf32> to vector<16x32xf32>
    %cst_76 = arith.constant dense<0.000000e+00> : vector<8x32xf32>
    %110 = tpu.matmul %107, %109, %cst_76 {dimension_numbers = #tpu.dot_dimension_numbers<[1], [0], [0], [1], [0, 0, 1, 1], [], []>} : vector<8x16xf32>, vector<16x32xf32>, vector<8x32xf32> -> vector<8x32xf32>
    %c2_77 = arith.constant 2 : index
    %c0_78 = arith.constant 0 : index
    %c0_79 = arith.constant 0 : index
    %111 = vector.load %arg4[%c2_77, %c0_78, %c0_79] : memref<4x1x32xf32, #tpu.memory_space<vmem>>, vector<1x1x32xf32>
    %112 = vector.shape_cast %111 : vector<1x1x32xf32> to vector<1x32xf32>
    %113 = vector.broadcast %112 : vector<1x32xf32> to vector<8x32xf32>
    %114 = arith.addf %110, %113 : vector<8x32xf32>
    %cst_80 = arith.constant 0.000000e+00 : f32
    %115 = vector.broadcast %cst_80 : f32 to vector<8x32xf32>
    %116 = arith.maximumf %114, %115 : vector<8x32xf32>
    %c2_81 = arith.constant 2 : index
    %c0_82 = arith.constant 0 : index
    %c0_83 = arith.constant 0 : index
    %117 = vector.load %arg5[%c2_81, %c0_82, %c0_83] : memref<4x32x32xf32, #tpu.memory_space<vmem>>, vector<1x32x32xf32>
    %118 = vector.shape_cast %117 : vector<1x32x32xf32> to vector<32x32xf32>
    %cst_84 = arith.constant dense<0.000000e+00> : vector<8x32xf32>
    %119 = tpu.matmul %116, %118, %cst_84 {dimension_numbers = #tpu.dot_dimension_numbers<[1], [0], [0], [1], [0, 0, 1, 1], [], []>} : vector<8x32xf32>, vector<32x32xf32>, vector<8x32xf32> -> vector<8x32xf32>
    %c2_85 = arith.constant 2 : index
    %c0_86 = arith.constant 0 : index
    %c0_87 = arith.constant 0 : index
    %120 = vector.load %arg6[%c2_85, %c0_86, %c0_87] : memref<4x1x32xf32, #tpu.memory_space<vmem>>, vector<1x1x32xf32>
    %121 = vector.shape_cast %120 : vector<1x1x32xf32> to vector<1x32xf32>
    %122 = vector.broadcast %121 : vector<1x32xf32> to vector<8x32xf32>
    %123 = arith.addf %119, %122 : vector<8x32xf32>
    %cst_88 = arith.constant 0.000000e+00 : f32
    %124 = vector.broadcast %cst_88 : f32 to vector<8x32xf32>
    %125 = arith.maximumf %123, %124 : vector<8x32xf32>
    %c2_89 = arith.constant 2 : index
    %c0_90 = arith.constant 0 : index
    %c0_91 = arith.constant 0 : index
    %126 = vector.load %arg7[%c2_89, %c0_90, %c0_91] : memref<4x32x16xf32, #tpu.memory_space<vmem>>, vector<1x32x16xf32>
    %127 = vector.shape_cast %126 : vector<1x32x16xf32> to vector<32x16xf32>
    %cst_92 = arith.constant dense<0.000000e+00> : vector<8x16xf32>
    %128 = tpu.matmul %125, %127, %cst_92 {dimension_numbers = #tpu.dot_dimension_numbers<[1], [0], [0], [1], [0, 0, 1, 1], [], []>} : vector<8x32xf32>, vector<32x16xf32>, vector<8x16xf32> -> vector<8x16xf32>
    %c2_93 = arith.constant 2 : index
    %c0_94 = arith.constant 0 : index
    %c0_95 = arith.constant 0 : index
    %129 = vector.load %arg8[%c2_93, %c0_94, %c0_95] : memref<4x1x16xf32, #tpu.memory_space<vmem>>, vector<1x1x16xf32>
    %130 = vector.shape_cast %129 : vector<1x1x16xf32> to vector<1x16xf32>
    %131 = vector.broadcast %130 : vector<1x16xf32> to vector<8x16xf32>
    %132 = arith.addf %128, %131 : vector<8x16xf32>
    %133 = math.tanh %132 : vector<8x16xf32>
    %c2_96 = arith.constant 2 : index
    %c0_97 = arith.constant 0 : index
    %c0_98 = arith.constant 0 : index
    %134 = vector.load %arg9[%c2_96, %c0_97, %c0_98] : memref<4x32x16xf32, #tpu.memory_space<vmem>>, vector<1x32x16xf32>
    %135 = vector.shape_cast %134 : vector<1x32x16xf32> to vector<32x16xf32>
    %cst_99 = arith.constant dense<0.000000e+00> : vector<8x16xf32>
    %136 = tpu.matmul %125, %135, %cst_99 {dimension_numbers = #tpu.dot_dimension_numbers<[1], [0], [0], [1], [0, 0, 1, 1], [], []>} : vector<8x32xf32>, vector<32x16xf32>, vector<8x16xf32> -> vector<8x16xf32>
    %c2_100 = arith.constant 2 : index
    %c0_101 = arith.constant 0 : index
    %c0_102 = arith.constant 0 : index
    %137 = vector.load %arg10[%c2_100, %c0_101, %c0_102] : memref<4x1x16xf32, #tpu.memory_space<vmem>>, vector<1x1x16xf32>
    %138 = vector.shape_cast %137 : vector<1x1x16xf32> to vector<1x16xf32>
    %139 = vector.broadcast %138 : vector<1x16xf32> to vector<8x16xf32>
    %140 = arith.addf %136, %139 : vector<8x16xf32>
    %141 = math.exp %133 : vector<8x16xf32>
    %142 = arith.mulf %96, %141 : vector<8x16xf32>
    %143 = arith.addf %142, %140 : vector<8x16xf32>
    %144 = vector.shape_cast %105 : vector<1x16xi1> to vector<1x16xi1>
    %145 = vector.broadcast %144 : vector<1x16xi1> to vector<8x16xi1>
    %146 = arith.select %145, %96, %143 : vector<8x16xi1>, vector<8x16xf32>
    %cst_103 = arith.constant 0.000000e+00 : f32
    %147 = vector.shape_cast %105 : vector<1x16xi1> to vector<1x16xi1>
    %148 = vector.broadcast %147 : vector<1x16xi1> to vector<8x16xi1>
    %149 = vector.broadcast %cst_103 : f32 to vector<8x16xf32>
    %150 = arith.select %148, %149, %133 : vector<8x16xi1>, vector<8x16xf32>
    %151 = arith.addf %101, %150 : vector<8x16xf32>
    %c3 = arith.constant 3 : index
    %c0_104 = arith.constant 0 : index
    %c0_105 = arith.constant 0 : index
    %152 = vector.load %arg2[%c3, %c0_104, %c0_105] : memref<4x1x16xf32, #tpu.memory_space<vmem>>, vector<1x1x16xf32>
    %153 = vector.shape_cast %152 : vector<1x1x16xf32> to vector<1x16xf32>
    %cst_106 = arith.constant 5.000000e-01 : f32
    %154 = vector.broadcast %cst_106 : f32 to vector<1x16xf32>
    %155 = arith.cmpf ogt, %153, %154 : vector<1x16xf32>
    %156 = vector.broadcast %153 : vector<1x16xf32> to vector<8x16xf32>
    %157 = arith.mulf %146, %156 : vector<8x16xf32>
    %c3_107 = arith.constant 3 : index
    %c0_108 = arith.constant 0 : index
    %c0_109 = arith.constant 0 : index
    %158 = vector.load %arg3[%c3_107, %c0_108, %c0_109] : memref<4x16x32xf32, #tpu.memory_space<vmem>>, vector<1x16x32xf32>
    %159 = vector.shape_cast %158 : vector<1x16x32xf32> to vector<16x32xf32>
    %cst_110 = arith.constant dense<0.000000e+00> : vector<8x32xf32>
    %160 = tpu.matmul %157, %159, %cst_110 {dimension_numbers = #tpu.dot_dimension_numbers<[1], [0], [0], [1], [0, 0, 1, 1], [], []>} : vector<8x16xf32>, vector<16x32xf32>, vector<8x32xf32> -> vector<8x32xf32>
    %c3_111 = arith.constant 3 : index
    %c0_112 = arith.constant 0 : index
    %c0_113 = arith.constant 0 : index
    %161 = vector.load %arg4[%c3_111, %c0_112, %c0_113] : memref<4x1x32xf32, #tpu.memory_space<vmem>>, vector<1x1x32xf32>
    %162 = vector.shape_cast %161 : vector<1x1x32xf32> to vector<1x32xf32>
    %163 = vector.broadcast %162 : vector<1x32xf32> to vector<8x32xf32>
    %164 = arith.addf %160, %163 : vector<8x32xf32>
    %cst_114 = arith.constant 0.000000e+00 : f32
    %165 = vector.broadcast %cst_114 : f32 to vector<8x32xf32>
    %166 = arith.maximumf %164, %165 : vector<8x32xf32>
    %c3_115 = arith.constant 3 : index
    %c0_116 = arith.constant 0 : index
    %c0_117 = arith.constant 0 : index
    %167 = vector.load %arg5[%c3_115, %c0_116, %c0_117] : memref<4x32x32xf32, #tpu.memory_space<vmem>>, vector<1x32x32xf32>
    %168 = vector.shape_cast %167 : vector<1x32x32xf32> to vector<32x32xf32>
    %cst_118 = arith.constant dense<0.000000e+00> : vector<8x32xf32>
    %169 = tpu.matmul %166, %168, %cst_118 {dimension_numbers = #tpu.dot_dimension_numbers<[1], [0], [0], [1], [0, 0, 1, 1], [], []>} : vector<8x32xf32>, vector<32x32xf32>, vector<8x32xf32> -> vector<8x32xf32>
    %c3_119 = arith.constant 3 : index
    %c0_120 = arith.constant 0 : index
    %c0_121 = arith.constant 0 : index
    %170 = vector.load %arg6[%c3_119, %c0_120, %c0_121] : memref<4x1x32xf32, #tpu.memory_space<vmem>>, vector<1x1x32xf32>
    %171 = vector.shape_cast %170 : vector<1x1x32xf32> to vector<1x32xf32>
    %172 = vector.broadcast %171 : vector<1x32xf32> to vector<8x32xf32>
    %173 = arith.addf %169, %172 : vector<8x32xf32>
    %cst_122 = arith.constant 0.000000e+00 : f32
    %174 = vector.broadcast %cst_122 : f32 to vector<8x32xf32>
    %175 = arith.maximumf %173, %174 : vector<8x32xf32>
    %c3_123 = arith.constant 3 : index
    %c0_124 = arith.constant 0 : index
    %c0_125 = arith.constant 0 : index
    %176 = vector.load %arg7[%c3_123, %c0_124, %c0_125] : memref<4x32x16xf32, #tpu.memory_space<vmem>>, vector<1x32x16xf32>
    %177 = vector.shape_cast %176 : vector<1x32x16xf32> to vector<32x16xf32>
    %cst_126 = arith.constant dense<0.000000e+00> : vector<8x16xf32>
    %178 = tpu.matmul %175, %177, %cst_126 {dimension_numbers = #tpu.dot_dimension_numbers<[1], [0], [0], [1], [0, 0, 1, 1], [], []>} : vector<8x32xf32>, vector<32x16xf32>, vector<8x16xf32> -> vector<8x16xf32>
    %c3_127 = arith.constant 3 : index
    %c0_128 = arith.constant 0 : index
    %c0_129 = arith.constant 0 : index
    %179 = vector.load %arg8[%c3_127, %c0_128, %c0_129] : memref<4x1x16xf32, #tpu.memory_space<vmem>>, vector<1x1x16xf32>
    %180 = vector.shape_cast %179 : vector<1x1x16xf32> to vector<1x16xf32>
    %181 = vector.broadcast %180 : vector<1x16xf32> to vector<8x16xf32>
    %182 = arith.addf %178, %181 : vector<8x16xf32>
    %183 = math.tanh %182 : vector<8x16xf32>
    %c3_130 = arith.constant 3 : index
    %c0_131 = arith.constant 0 : index
    %c0_132 = arith.constant 0 : index
    %184 = vector.load %arg9[%c3_130, %c0_131, %c0_132] : memref<4x32x16xf32, #tpu.memory_space<vmem>>, vector<1x32x16xf32>
    %185 = vector.shape_cast %184 : vector<1x32x16xf32> to vector<32x16xf32>
    %cst_133 = arith.constant dense<0.000000e+00> : vector<8x16xf32>
    %186 = tpu.matmul %175, %185, %cst_133 {dimension_numbers = #tpu.dot_dimension_numbers<[1], [0], [0], [1], [0, 0, 1, 1], [], []>} : vector<8x32xf32>, vector<32x16xf32>, vector<8x16xf32> -> vector<8x16xf32>
    %c3_134 = arith.constant 3 : index
    %c0_135 = arith.constant 0 : index
    %c0_136 = arith.constant 0 : index
    %187 = vector.load %arg10[%c3_134, %c0_135, %c0_136] : memref<4x1x16xf32, #tpu.memory_space<vmem>>, vector<1x1x16xf32>
    %188 = vector.shape_cast %187 : vector<1x1x16xf32> to vector<1x16xf32>
    %189 = vector.broadcast %188 : vector<1x16xf32> to vector<8x16xf32>
    %190 = arith.addf %186, %189 : vector<8x16xf32>
    %191 = math.exp %183 : vector<8x16xf32>
    %192 = arith.mulf %146, %191 : vector<8x16xf32>
    %193 = arith.addf %192, %190 : vector<8x16xf32>
    %194 = vector.shape_cast %155 : vector<1x16xi1> to vector<1x16xi1>
    %195 = vector.broadcast %194 : vector<1x16xi1> to vector<8x16xi1>
    %196 = arith.select %195, %146, %193 : vector<8x16xi1>, vector<8x16xf32>
    %cst_137 = arith.constant 0.000000e+00 : f32
    %197 = vector.shape_cast %155 : vector<1x16xi1> to vector<1x16xi1>
    %198 = vector.broadcast %197 : vector<1x16xi1> to vector<8x16xi1>
    %199 = vector.broadcast %cst_137 : f32 to vector<8x16xf32>
    %200 = arith.select %198, %199, %183 : vector<8x16xi1>, vector<8x16xf32>
    %201 = arith.addf %151, %200 : vector<8x16xf32>
    %c0_138 = arith.constant 0 : index
    %c0_139 = arith.constant 0 : index
    %202 = vector.load %arg11[%c0_138, %c0_139] : memref<8x16xf32, #tpu.memory_space<vmem>>, vector<8x16xf32>
    tpu.vector_store %arg11[%c0_138, %c0_139], %196 {strides = array<i32>} : memref<8x16xf32, #tpu.memory_space<vmem>>, vector<8x16xf32>,
    %c0_140 = arith.constant 0 : index
    %c0_141 = arith.constant 0 : index
    %203 = vector.load %arg12[%c0_140, %c0_141] : memref<8x16xf32, #tpu.memory_space<vmem>>, vector<8x16xf32>
    tpu.vector_store %arg12[%c0_140, %c0_141], %201 {strides = array<i32>} : memref<8x16xf32, #tpu.memory_space<vmem>>, vector<8x16xf32>,
    return
  }
  func.func @transform_0(%arg0: i32) -> (i32, i32) {
    %c0_i32 = arith.constant 0 : i32
    %c0_i32_0 = arith.constant 0 : i32
    return %arg0, %c0_i32 : i32, i32
  }
  func.func @transform_1(%arg0: i32) -> (i32, i32, i32) {
    %c0_i32 = arith.constant 0 : i32
    %c0_i32_0 = arith.constant 0 : i32
    %c0_i32_1 = arith.constant 0 : i32
    %c0_i32_2 = arith.constant 0 : i32
    return %c0_i32, %c0_i32_0, %c0_i32_1 : i32, i32, i32
  }
  func.func @transform_2(%arg0: i32) -> (i32, i32, i32) {
    %c0_i32 = arith.constant 0 : i32
    %c0_i32_0 = arith.constant 0 : i32
    %c0_i32_1 = arith.constant 0 : i32
    %c0_i32_2 = arith.constant 0 : i32
    return %c0_i32, %c0_i32_0, %c0_i32_1 : i32, i32, i32
  }
  func.func @transform_3(%arg0: i32) -> (i32, i32, i32) {
    %c0_i32 = arith.constant 0 : i32
    %c0_i32_0 = arith.constant 0 : i32
    %c0_i32_1 = arith.constant 0 : i32
    %c0_i32_2 = arith.constant 0 : i32
    return %c0_i32, %c0_i32_0, %c0_i32_1 : i32, i32, i32
  }
  func.func @transform_4(%arg0: i32) -> (i32, i32, i32) {
    %c0_i32 = arith.constant 0 : i32
    %c0_i32_0 = arith.constant 0 : i32
    %c0_i32_1 = arith.constant 0 : i32
    %c0_i32_2 = arith.constant 0 : i32
    return %c0_i32, %c0_i32_0, %c0_i32_1 : i32, i32, i32
  }
  func.func @transform_5(%arg0: i32) -> (i32, i32, i32) {
    %c0_i32 = arith.constant 0 : i32
    %c0_i32_0 = arith.constant 0 : i32
    %c0_i32_1 = arith.constant 0 : i32
    %c0_i32_2 = arith.constant 0 : i32
    return %c0_i32, %c0_i32_0, %c0_i32_1 : i32, i32, i32
  }
  func.func @transform_6(%arg0: i32) -> (i32, i32, i32) {
    %c0_i32 = arith.constant 0 : i32
    %c0_i32_0 = arith.constant 0 : i32
    %c0_i32_1 = arith.constant 0 : i32
    %c0_i32_2 = arith.constant 0 : i32
    return %c0_i32, %c0_i32_0, %c0_i32_1 : i32, i32, i32
  }
  func.func @transform_7(%arg0: i32) -> (i32, i32, i32) {
    %c0_i32 = arith.constant 0 : i32
    %c0_i32_0 = arith.constant 0 : i32
    %c0_i32_1 = arith.constant 0 : i32
    %c0_i32_2 = arith.constant 0 : i32
    return %c0_i32, %c0_i32_0, %c0_i32_1 : i32, i32, i32
  }
  func.func @transform_8(%arg0: i32) -> (i32, i32, i32) {
    %c0_i32 = arith.constant 0 : i32
    %c0_i32_0 = arith.constant 0 : i32
    %c0_i32_1 = arith.constant 0 : i32
    %c0_i32_2 = arith.constant 0 : i32
    return %c0_i32, %c0_i32_0, %c0_i32_1 : i32, i32, i32
  }
  func.func @transform_9(%arg0: i32) -> (i32, i32, i32) {
    %c0_i32 = arith.constant 0 : i32
    %c0_i32_0 = arith.constant 0 : i32
    %c0_i32_1 = arith.constant 0 : i32
    %c0_i32_2 = arith.constant 0 : i32
    return %c0_i32, %c0_i32_0, %c0_i32_1 : i32, i32, i32
  }
  func.func @transform_10(%arg0: i32) -> (i32, i32) {
    %c0_i32 = arith.constant 0 : i32
    %c0_i32_0 = arith.constant 0 : i32
    return %arg0, %c0_i32 : i32, i32
  }
  func.func @transform_11(%arg0: i32) -> (i32, i32) {
    %c0_i32 = arith.constant 0 : i32
    %c0_i32_0 = arith.constant 0 : i32
    return %arg0, %c0_i32 : i32, i32
  }
}

</mosaic_0001>

<bundles_post_ra>
// kernel: tpu_custom_call.1
= control target key start
LH: loop header
LB: loop body
LE: loop exit
PB: predicated region body
PF: predicated region fallthrough
CT: control target
= control target key end

     0   :  { %17 = vsyncpa [#allocation3], 0  ;;  %v43_v2 = vlaneseq  ;;  %v1998_v3 = vmov 0.0|0.0   ;;  %vm1999_vm0 = vmmov 0   ;;  %v2000_v5 = vmov 0.0   ;;  %s2473_s0 = inlined_call_operand.vmem [shape: f32[8,16], index: 0, kind: input, shape index: {}]   ;;  %s2474_s1 = inlined_call_operand.vmem [shape: f32[4,1,16], index: 1, kind: input, shape index: {}]   ;;  %s2475_s2 = inlined_call_operand.vmem [shape: f32[4,16,32], index: 2, kind: input, shape index: {}]   ;;  %s2476_s3 = inlined_call_operand.vmem [shape: f32[4,1,32], index: 3, kind: input, shape index: {}]   ;;  %s2477_s4 = inlined_call_operand.vmem [shape: f32[4,32,32], index: 4, kind: input, shape index: {}]   ;;  %s2478_s5 = inlined_call_operand.vmem [shape: f32[4,1,32], index: 5, kind: input, shape index: {}]   ;;  %s2479_s6 = inlined_call_operand.vmem [shape: f32[4,32,16], index: 6, kind: input, shape index: {}]   ;;  %s2480_s7 = inlined_call_operand.vmem [shape: f32[4,1,16], index: 7, kind: input, shape index: {}]   ;;  %s2481_s8 = inlined_call_operand.vmem [shape: f32[4,32,16], index: 8, kind: input, shape index: {}]   ;;  %s2482_s9 = inlined_call_operand.vmem [shape: f32[4,1,16], index: 9, kind: input, shape index: {}]   ;;  %s2483_s10 = inlined_call_operand.hbm [shape: f32[8,16], index: 10, kind: output, shape index: {0}]   ;;  %s2484_s11 = inlined_call_operand.hbm [shape: f32[8,16], index: 11, kind: output, shape index: {1}]  }
   0x1   :  { %v49_v0 = vld [vmem:[%s2475_s2] sm:$0xff]  ;;  %v50_v1 = vld [vmem:[%s2475_s2 + $0x8] sm:$0xff]  ;;  %1844 = vmatprep.subr.bf16.mxu1 %v1998_v3  ;;  %1688 = vmatprep.mubr.msk.f32.mxu1 %vm1999_vm0, %v2000_v5 }
   0x2   :  { %v1845_v4 = vpack.c.bf16 %v50_v1, %v49_v0  ;;  %v44_v6 = vshrl.u32 %v43_v2, 7  ;;  %1853 = vmatprep.subr.bf16.mxu0 %v1998_v3  ;;  %1710 = vmatprep.mubr.msk.f32.mxu0 %vm1999_vm0, %v2000_v5 }
   0x3   :  { %18 = vsyncpa [#allocation5], 0  ;;  %v2079_v7 = vld [vmem:[%s2474_s1] sm:$0x1]  ;;  %v134_v10 = vld [vmem:[%s2477_s4 + $0x8] sm:$0xff]  ;;  %vm58_vm1 = vcmask 130048  }
   0x4   :  { %1846 = vmatpush3.bf16.msra.mxu1 %v1845_v4  ;;  %v2081_v8 = vsub.s32 0, %v44_v6  ;;  %v133_v9 = vld [vmem:[%s2477_s4] sm:$0xff]  ;;  %v135_v15 = vld [vmem:[%s2477_s4 + $0x10] sm:$0xff]  ;;  %v136_v16 = vld [vmem:[%s2477_s4 + $0x18] sm:$0xff]  ;;  %vm144_vm2 = vcmask 261120   ;;  %vm41_vm3 = vcmp.gt.f32.partialorder %v2079_v7, 0.5 }
   0x5   :  { %1847 = vmatprep.subr.bf16.mxu1 %v1998_v3  ;;  %v2093_v11 = vld [vmem:[%s2473_s0] sm:$0xff]  ;;  %v1848_v13 = vpack.c.bf16 %v134_v10, %v133_v9  ;;  %v1851_v17 = vpack.c.bf16 %v136_v16, %v135_v15  ;;  %v220_v19 = vld [vmem:[%s2479_s6 + $0x8] sm:$0xff]  ;;  %v221_v29 = vld [vmem:[%s2479_s6 + $0x10] sm:$0xff]  ;;  %v2001_v49 = vmov 0  }
   0x6   :  { %v46_v12 = vrot.slane %v2079_v7, %v2081_v8  ;;  %v219_v18 = vld [vmem:[%s2479_s6] sm:$0xff]  ;;  %v305_v23 = vld [vmem:[%s2481_s8 + $0x8] sm:$0xff]  ;;  %v222_v30 = vld [vmem:[%s2479_s6 + $0x18] sm:$0xff]  ;;  %v389_v50 = vsel %vm41_vm3, 1, %v2001_v49 }
   0x7   :  { %v1854_v20 = vpack.c.bf16 %v220_v19, %v219_v18  ;;  %v1523_v21 = vld [vmem:[%s2476_s3] ss:$0 sm:$0xff]  ;;  %v306_v31 = vld [vmem:[%s2481_s8 + $0x10] sm:$0xff]  ;;  %v1857_v32 = vpack.c.bf16 %v222_v30, %v221_v29  ;;  %v307_v33 = vld [vmem:[%s2481_s8 + $0x18] sm:$0xff]  ;;  %v393_v51 = vrot.slane %v389_v50, %v2081_v8 }
   0x8   :  { %v48_v14 = vmul.f32 %v46_v12, %v2093_v11  ;;  %v304_v22 = vld [vmem:[%s2481_s8] sm:$0xff]  ;;  %v1863_v34 = vpack.c.bf16 %v307_v33, %v306_v31  ;;  %v1532_v40 = vld [vmem:[%s2475_s2 + $0x10] sm:$0xff]  ;;  %v1533_v41 = vld [vmem:[%s2475_s2 + $0x18] sm:$0xff] }
   0x9   :  { %1855 = vmatpush3.bf16.msra.mxu0 %v1854_v20  ;;  %v1860_v27 = vpack.c.bf16 %v305_v23, %v304_v22  ;;  %v1525_v35 = vld [vmem:[%s2478_s5] ss:$0 sm:$0xff]  ;;  %v1866_v42 = vpack.c.bf16 %v1533_v41, %v1532_v40  ;;  %vm2165_vm4 = vcmp.eq.s32.totalorder %v393_v51, 1  ;;  %v2181_v57 = vld [vmem:[%s2474_s1 + $0x1] sm:$0x1]  ;;  %v1538_v63 = vld [vmem:[%s2477_s4 + $0x28] sm:$0xff] }
   0xa   :  { %1689 = vmatmul.mubr.msk.f32.vlgmr.msra.gmra.mrb[0].mxu1 %vm58_vm1, %v48_v14  ;;  %1856 = vmatprep.subr.bf16.mxu0 %v1998_v3  ;;  %v1527_v43 = vld [vmem:[%s2480_s7] ss:$0 sm:$0xff]  ;;  %v405_v61 = vrot.slane %v2181_v57, %v2081_v8  ;;  %v1539_v6 = vld [vmem:[%s2477_s4 + $0x30] sm:$0xff]  ;;  %v1540_v7 = vld [vmem:[%s2477_s4 + $0x38] sm:$0xff]  ;;  %vm400_vm5 = vcmp.gt.f32.partialorder %v2181_v57, 0.5 }
   0xb   :  { %1849 = vmatpush3.bf16.msra.mxu1 %v1848_v13  ;;  %1699 = vmatprep.mubr.msk.f32.mxu1 %vm1999_vm0, %v2000_v5  ;;  %v1529_v56 = vld [vmem:[%s2482_s9] ss:$0 sm:$0xff]  ;;  %v1872_v9 = vpack.c.bf16 %v1540_v7, %v1539_v6  ;;  %v1535_v13 = vld [vmem:[%s2476_s3 + $0x1] ss:$0 sm:$0xff]  ;;  %v1552_v15 = vld [vmem:[%s2481_s8 + $0x28] sm:$0xff]  ;;  %v754_v41 = vsel %vm400_vm5, 1, %v2001_v49 }
   0xc   :  { %1850 = vmatprep.subr.bf16.mxu1 %v1998_v3  ;;  %v1537_v62 = vld [vmem:[%s2477_s4 + $0x20] sm:$0xff]  ;;  %v1547_v22 = vld [vmem:[%s2479_s6 + $0x38] sm:$0xff]  ;;  %v1553_v23 = vld [vmem:[%s2481_s8 + $0x30] sm:$0xff] }
   0xd   :  { %1858 = vmatpush3.bf16.msra.mxu0 %v1857_v32  ;;  %v1869_v2 = vpack.c.bf16 %v1538_v63, %v1537_v62  ;;  %v1544_v10 = vld [vmem:[%s2479_s6 + $0x20] sm:$0xff]  ;;  %v1560_v33 = vld [vmem:[%s2475_s2 + $0x28] sm:$0xff] }
   0xe   :  { %1865 = vmatprep.subr.bf16.mxu0 %v1998_v3  ;;  %v1551_v14 = vld [vmem:[%s2481_s8 + $0x20] sm:$0xff]  ;;  %v1579_v6 = vld [vmem:[%s2481_s8 + $0x48] sm:$0xff] }
   0xf   :  { %1852 = vmatpush3.bf16.msra.mxu1 %v1851_v17  ;;  %v1881_v19 = vpack.c.bf16 %v1552_v15, %v1551_v14  ;;  %v1559_v32 = vld [vmem:[%s2475_s2 + $0x20] sm:$0xff]  ;;  %v1574_v14 = vld [vmem:[%s2479_s6 + $0x58] sm:$0xff]  ;;  %v1580_v15 = vld [vmem:[%s2481_s8 + $0x50] sm:$0xff] }
  0x10   :  { %1859 = vmatprep.subr.bf16.mxu1 %v1998_v3  ;;  %v1571_v63 = vld [vmem:[%s2479_s6 + $0x40] sm:$0xff] }
  0xdd   :  { %v128_v24 = vpop.f32.mrb[0].mxu1 }
  0xde   :  { %v129_v25 = vadd.f32 %v1523_v21, %v128_v24  ;;  %v1690_v26 = vpop.f32.mrb[1].mxu1  ;;  %v1546_v21 = vld [vmem:[%s2479_s6 + $0x30] sm:$0xff] }
  0xdf   :  { %v1878_v24 = vpack.c.bf16 %v1547_v22, %v1546_v21 }
  0xe0   :  { %v132_v28 = vmax.f32 %v129_v25, 0.0  ;;  %v1554_v25 = vld [vmem:[%s2481_s8 + $0x38] sm:$0xff] }
  0xe1   :  { %v1884_v26 = vpack.c.bf16 %v1554_v25, %v1553_v23  ;;  %v1587_v25 = vld [vmem:[%s2475_s2 + $0x38] sm:$0xff] }
  0xe2   :  { %1700 = vmatmul.mubr.msk.f32.vlgmr.msra.gmra.mrb[2].mxu1 %vm144_vm2, %v132_v28 }
  0xe3   :  { %1861 = vmatpush3.bf16.msra.mxu1 %v1860_v27  ;;  %1721 = vmatprep.mubr.msk.f32.mxu1 %vm1999_vm0, %v2000_v5  ;;  %v1542_v27 = vld [vmem:[%s2478_s5 + $0x1] ss:$0 sm:$0xff] }
  0xe4   :  { %1862 = vmatprep.subr.bf16.mxu1 %v1998_v3 }
  0xe7   :  { %1864 = vmatpush3.bf16.msra.mxu1 %v1863_v34  ;;  %v1887_v34 = vpack.c.bf16 %v1560_v33, %v1559_v32 }
  0xe8   :  { %1874 = vmatprep.subr.bf16.mxu1 %v1998_v3 }
 0x1b5   :  { %v214_v36 = vpop.f32.mrb[2].mxu1 }
 0x1b6   :  { %v215_v37 = vadd.f32 %v1525_v35, %v214_v36  ;;  %v1701_v38 = vpop.f32.mrb[3].mxu1  ;;  %v1549_v35 = vld [vmem:[%s2480_s7 + $0x1] ss:$0 sm:$0xff] }
 0x1b8   :  { %v218_v39 = vmax.f32 %v215_v37, 0.0 }
 0x1ba   :  { %1711 = vmatmul.mubr.msk.f32.vlgmr.msra.gmra.mrb[0].mxu0 %vm144_vm2, %v218_v39  ;;  %1722 = vmatmul.mubr.msk.f32.vlgmr.msra.gmra.mrb[4].mxu1 %vm144_vm2, %v218_v39 }
 0x1bb   :  { %1728 = vmatprep.mubr.msk.f32.mxu0 %vm1999_vm0, %v2000_v5  ;;  %1750 = vmatprep.mubr.msk.f32.mxu1 %vm1999_vm0, %v2000_v5 }
 0x1bc   :  { %1867 = vmatpush3.bf16.msra.mxu0 %v1866_v42  ;;  %v758_v42 = vrot.slane %v754_v41, %v2081_v8 }
 0x1bd   :  { %1868 = vmatprep.subr.bf16.mxu0 %v1998_v3 }
 0x1be   :  { %vm759_vm6 = vcmp.eq.s32.totalorder %v758_v42, 1 }
 0x28d   :  { %v299_v44 = vpop.f32.mrb[0].mxu0  ;;  %v381_v45 = vpop.f32.mrb[4].mxu1 }
 0x28e   :  { %v300_v46 = vadd.f32 %v1527_v43, %v299_v44  ;;  %v1712_v47 = vpop.f32.mrb[1].mxu0  ;;  %v1723_v48 = vpop.f32.mrb[5].mxu1  ;;  %v382_v59 = vadd.f32 %v1529_v56, %v381_v45 }
 0x28f   :  { %v1556_v47 = vld [vmem:[%s2482_s9 + $0x1] ss:$0 sm:$0xff]  ;;  %v2277_v48 = vld [vmem:[%s2474_s1 + $0x2] sm:$0x1] }
 0x290   :  { %1934 = vtanh.f32 %v300_v46  ;;  %v770_v52 = vrot.slane %v2277_v48, %v2081_v8  ;;  %vm765_vm7 = vcmp.gt.f32.partialorder %v2277_v48, 0.5 }
 0x291   :  { %v1119_v33 = vsel %vm765_vm7, 1, %v2001_v49 }
 0x29a   :  { %v2169_v53 = vpop.eup %1934 }
 0x29b   :  { %v385_v54 = vmul.f32 1.442695, %v2169_v53  ;;  %v396_v55 = vsel %vm2165_vm4, 0.0, %v2169_v53  ;;  %v1564_v53 = vld [vmem:[%s2477_s4 + $0x40] sm:$0xff] }
 0x29d   :  { %1936 = vpow2.f32 %v385_v54 }
 0x2a7   :  { %v1937_v58 = vpop.eup %1936 }
 0x2a8   :  { %v387_v60 = vmul.f32 %v1937_v58, %v2093_v11 }
 0x2aa   :  { %v388_v0 = vadd.f32 %v387_v60, %v382_v59  ;;  %v1566_v60 = vld [vmem:[%s2477_s4 + $0x50] sm:$0xff] }
 0x2ac   :  { %v2195_v1 = vsel %vm2165_vm4, %v2093_v11, %v388_v0  ;;  %v1545_v11 = vld [vmem:[%s2479_s6 + $0x28] sm:$0xff] }
 0x2ad   :  { %v407_v4 = vmul.f32 %v405_v61, %v2195_v1  ;;  %v1875_v12 = vpack.c.bf16 %v1545_v11, %v1544_v10  ;;  %v1567_v61 = vld [vmem:[%s2477_s4 + $0x58] sm:$0xff]  ;;  %v1572_v0 = vld [vmem:[%s2479_s6 + $0x48] sm:$0xff] }
 0x2ae   :  { %v1893_v62 = vpack.c.bf16 %v1567_v61, %v1566_v60  ;;  %v1606_v60 = vld [vmem:[%s2481_s8 + $0x68] sm:$0xff] }
 0x2af   :  { %1729 = vmatmul.mubr.msk.f32.vlgmr.msra.gmra.mrb[2].mxu0 %vm58_vm1, %v407_v4  ;;  %1876 = vmatpush3.bf16.msra.mxu1 %v1875_v12  ;;  %v1578_v4 = vld [vmem:[%s2481_s8 + $0x40] sm:$0xff] }
 0x2b0   :  { %1870 = vmatpush3.bf16.msra.mxu0 %v1869_v2  ;;  %1739 = vmatprep.mubr.msk.f32.mxu0 %vm1999_vm0, %v2000_v5  ;;  %v1562_v2 = vld [vmem:[%s2476_s3 + $0x2] ss:$0 sm:$0xff]  ;;  %v1902_v11 = vpack.c.bf16 %v1579_v6, %v1578_v4  ;;  %v1601_v4 = vld [vmem:[%s2479_s6 + $0x78] sm:$0xff]  ;;  %v1607_v6 = vld [vmem:[%s2481_s8 + $0x70] sm:$0xff] }
 0x2b1   :  { %1871 = vmatprep.subr.bf16.mxu0 %v1998_v3  ;;  %1877 = vmatprep.subr.bf16.mxu1 %v1998_v3 }
 0x2b3   :  { %1879 = vmatpush3.bf16.msra.mxu1 %v1878_v24  ;;  %v1586_v24 = vld [vmem:[%s2475_s2 + $0x30] sm:$0xff] }
 0x2b4   :  { %1873 = vmatpush3.bf16.msra.mxu0 %v1872_v9  ;;  %1886 = vmatprep.subr.bf16.mxu1 %v1998_v3 }
 0x2b5   :  { %1880 = vmatprep.subr.bf16.mxu0 %v1998_v3 }
 0x382   :  { %v488_v16 = vpop.f32.mrb[2].mxu0 }
 0x383   :  { %v489_v17 = vadd.f32 %v1535_v13, %v488_v16  ;;  %v1730_v18 = vpop.f32.mrb[3].mxu0  ;;  %v1573_v13 = vld [vmem:[%s2479_s6 + $0x50] sm:$0xff] }
 0x384   :  { %v1899_v16 = vpack.c.bf16 %v1574_v14, %v1573_v13  ;;  %v1603_v14 = vld [vmem:[%s2480_s7 + $0x3] ss:$0 sm:$0xff] }
 0x385   :  { %v492_v20 = vmax.f32 %v489_v17, 0.0  ;;  %v1581_v17 = vld [vmem:[%s2481_s8 + $0x58] sm:$0xff] }
 0x386   :  { %v1905_v18 = vpack.c.bf16 %v1581_v17, %v1580_v15 }
 0x387   :  { %1740 = vmatmul.mubr.msk.f32.vlgmr.msra.gmra.mrb[4].mxu0 %vm144_vm2, %v492_v20 }
 0x388   :  { %1882 = vmatpush3.bf16.msra.mxu0 %v1881_v19  ;;  %1761 = vmatprep.mubr.msk.f32.mxu0 %vm1999_vm0, %v2000_v5  ;;  %v1569_v19 = vld [vmem:[%s2478_s5 + $0x2] ss:$0 sm:$0xff] }
 0x389   :  { %1883 = vmatprep.subr.bf16.mxu0 %v1998_v3 }
 0x38c   :  { %1885 = vmatpush3.bf16.msra.mxu0 %v1884_v26  ;;  %v1908_v26 = vpack.c.bf16 %v1587_v25, %v1586_v24 }
 0x38d   :  { %1895 = vmatprep.subr.bf16.mxu0 %v1998_v3 }
 0x45a   :  { %v575_v28 = vpop.f32.mrb[4].mxu0 }
 0x45b   :  { %v576_v29 = vadd.f32 %v1542_v27, %v575_v28  ;;  %v1741_v30 = vpop.f32.mrb[5].mxu0  ;;  %v1576_v27 = vld [vmem:[%s2480_s7 + $0x2] ss:$0 sm:$0xff] }
 0x45d   :  { %v579_v31 = vmax.f32 %v576_v29, 0.0 }
 0x45f   :  { %1751 = vmatmul.mubr.msk.f32.vlgmr.msra.gmra.mrb[6].mxu1 %vm144_vm2, %v579_v31  ;;  %1762 = vmatmul.mubr.msk.f32.vlgmr.msra.gmra.mrb[6].mxu0 %vm144_vm2, %v579_v31 }
 0x460   :  { %1768 = vmatprep.mubr.msk.f32.mxu1 %vm1999_vm0, %v2000_v5  ;;  %1790 = vmatprep.mubr.msk.f32.mxu0 %vm1999_vm0, %v2000_v5 }
 0x461   :  { %1888 = vmatpush3.bf16.msra.mxu1 %v1887_v34  ;;  %v1123_v34 = vrot.slane %v1119_v33, %v2081_v8 }
 0x462   :  { %1889 = vmatprep.subr.bf16.mxu1 %v1998_v3 }
 0x463   :  { %vm1124_vm8 = vcmp.eq.s32.totalorder %v1123_v34, 1 }
 0x532   :  { %v662_v36 = vpop.f32.mrb[6].mxu1  ;;  %v746_v37 = vpop.f32.mrb[6].mxu0 }
 0x533   :  { %v663_v38 = vadd.f32 %v1549_v35, %v662_v36  ;;  %v1752_v39 = vpop.f32.mrb[7].mxu1  ;;  %v1763_v40 = vpop.f32.mrb[7].mxu0  ;;  %v747_v51 = vadd.f32 %v1556_v47, %v746_v37 }
 0x534   :  { %v1583_v39 = vld [vmem:[%s2482_s9 + $0x2] ss:$0 sm:$0xff]  ;;  %v1585_v40 = vld [vmem:[%s2474_s1 + $0x3] sm:$0x1] }
 0x535   :  { %1938 = vtanh.f32 %v663_v38  ;;  %vm1130_vm9 = vcmp.gt.f32.partialorder %v1585_v40, 0.5 }
 0x53f   :  { %v1939_v43 = vpop.eup %1938 }
 0x540   :  { %v750_v44 = vmul.f32 1.442695, %v1939_v43  ;;  %v761_v45 = vsel %vm759_vm6, 0.0, %v1939_v43 }
 0x541   :  { %v2269_v46 = vadd.f32 %v761_v45, %v396_v55  ;;  %v1565_v55 = vld [vmem:[%s2477_s4 + $0x48] sm:$0xff]  ;;  %v1591_v45 = vld [vmem:[%s2477_s4 + $0x60] sm:$0xff] }
 0x542   :  { %1940 = vpow2.f32 %v750_v44  ;;  %v1890_v58 = vpack.c.bf16 %v1565_v55, %v1564_v53  ;;  %v1135_v44 = vrot.slane %v1585_v40, %v2081_v8  ;;  %v1598_v55 = vld [vmem:[%s2479_s6 + $0x60] sm:$0xff] }
 0x54c   :  { %v1941_v50 = vpop.eup %1940 }
 0x54d   :  { %v752_v54 = vmul.f32 %v1941_v50, %v2195_v1 }
 0x54f   :  { %v753_v56 = vadd.f32 %v752_v54, %v747_v51  ;;  %v1593_v54 = vld [vmem:[%s2477_s4 + $0x70] sm:$0xff] }
 0x551   :  { %v2289_v57 = vsel %vm759_vm6, %v2195_v1, %v753_v56  ;;  %v1896_v1 = vpack.c.bf16 %v1572_v0, %v1571_v63  ;;  %v1599_v56 = vld [vmem:[%s2479_s6 + $0x68] sm:$0xff] }
 0x552   :  { %v772_v59 = vmul.f32 %v770_v52, %v2289_v57  ;;  %v1594_v52 = vld [vmem:[%s2477_s4 + $0x78] sm:$0xff] }
 0x553   :  { %1897 = vmatpush3.bf16.msra.mxu0 %v1896_v1  ;;  %v1914_v53 = vpack.c.bf16 %v1594_v52, %v1593_v54 }
 0x554   :  { %1769 = vmatmul.mubr.msk.f32.vlgmr.msra.gmra.mrb[8].mxu1 %vm58_vm1, %v772_v59  ;;  %1898 = vmatprep.subr.bf16.mxu0 %v1998_v3  ;;  %v1605_v59 = vld [vmem:[%s2481_s8 + $0x60] sm:$0xff] }
 0x555   :  { %1891 = vmatpush3.bf16.msra.mxu1 %v1890_v58  ;;  %1779 = vmatprep.mubr.msk.f32.mxu1 %vm1999_vm0, %v2000_v5  ;;  %v1589_v58 = vld [vmem:[%s2476_s3 + $0x3] ss:$0 sm:$0xff]  ;;  %v1923_v0 = vpack.c.bf16 %v1606_v60, %v1605_v59 }
 0x556   :  { %1892 = vmatprep.subr.bf16.mxu1 %v1998_v3 }
 0x557   :  { %1900 = vmatpush3.bf16.msra.mxu0 %v1899_v16 }
 0x558   :  { %1907 = vmatprep.subr.bf16.mxu0 %v1998_v3 }
 0x559   :  { %1894 = vmatpush3.bf16.msra.mxu1 %v1893_v62 }
 0x55a   :  { %1901 = vmatprep.subr.bf16.mxu1 %v1998_v3 }
 0x627   :  { %v853_v7 = vpop.f32.mrb[8].mxu1 }
 0x628   :  { %v854_v9 = vadd.f32 %v1562_v2, %v853_v7  ;;  %v1770_v10 = vpop.f32.mrb[9].mxu1  ;;  %v1600_v2 = vld [vmem:[%s2479_s6 + $0x70] sm:$0xff] }
 0x629   :  { %v1920_v7 = vpack.c.bf16 %v1601_v4, %v1600_v2 }
 0x62a   :  { %v857_v12 = vmax.f32 %v854_v9, 0.0  ;;  %v1608_v9 = vld [vmem:[%s2481_s8 + $0x78] sm:$0xff] }
 0x62c   :  { %1780 = vmatmul.mubr.msk.f32.vlgmr.msra.gmra.mrb[10].mxu1 %vm144_vm2, %v857_v12 }
 0x62d   :  { %1903 = vmatpush3.bf16.msra.mxu1 %v1902_v11  ;;  %1801 = vmatprep.mubr.msk.f32.mxu1 %vm1999_vm0, %v2000_v5 }
 0x62e   :  { %1904 = vmatprep.subr.bf16.mxu1 %v1998_v3 }
 0x631   :  { %1906 = vmatpush3.bf16.msra.mxu1 %v1905_v18 }
 0x632   :  { %1916 = vmatprep.subr.bf16.mxu1 %v1998_v3 }
 0x6ff   :  { %v940_v20 = vpop.f32.mrb[10].mxu1 }
 0x700   :  { %v941_v21 = vadd.f32 %v1569_v19, %v940_v20  ;;  %v1781_v22 = vpop.f32.mrb[11].mxu1  ;;  %v1484_v20 = vsel %vm1130_vm9, 1, %v2001_v49 }
 0x702   :  { %v944_v23 = vmax.f32 %v941_v21, 0.0  ;;  %v1488_v21 = vrot.slane %v1484_v20, %v2081_v8 }
 0x704   :  { %1791 = vmatmul.mubr.msk.f32.vlgmr.msra.gmra.mrb[8].mxu0 %vm144_vm2, %v944_v23  ;;  %1802 = vmatmul.mubr.msk.f32.vlgmr.msra.gmra.mrb[12].mxu1 %vm144_vm2, %v944_v23  ;;  %vm2433_vm10 = vcmp.eq.s32.totalorder %v1488_v21, 1 }
 0x705   :  { %1808 = vmatprep.mubr.msk.f32.mxu0 %vm1999_vm0, %v2000_v5  ;;  %1830 = vmatprep.mubr.msk.f32.mxu1 %vm1999_vm0, %v2000_v5 }
 0x706   :  { %1909 = vmatpush3.bf16.msra.mxu0 %v1908_v26 }
 0x707   :  { %1910 = vmatprep.subr.bf16.mxu0 %v1998_v3 }
 0x7d7   :  { %v1027_v28 = vpop.f32.mrb[8].mxu0  ;;  %v1111_v29 = vpop.f32.mrb[12].mxu1 }
 0x7d8   :  { %v1028_v30 = vadd.f32 %v1576_v27, %v1027_v28  ;;  %v1792_v31 = vpop.f32.mrb[9].mxu0  ;;  %v1803_v32 = vpop.f32.mrb[13].mxu1  ;;  %v1112_v42 = vadd.f32 %v1583_v39, %v1111_v29 }
 0x7da   :  { %1942 = vtanh.f32 %v1028_v30 }
 0x7e4   :  { %v1943_v35 = vpop.eup %1942 }
 0x7e5   :  { %v1115_v36 = vmul.f32 1.442695, %v1943_v35  ;;  %v1126_v37 = vsel %vm1124_vm8, 0.0, %v1943_v35 }
 0x7e6   :  { %v2360_v38 = vadd.f32 %v1126_v37, %v2269_v46  ;;  %v1592_v46 = vld [vmem:[%s2477_s4 + $0x68] sm:$0xff] }
 0x7e7   :  { %1944 = vpow2.f32 %v1115_v36  ;;  %v1911_v50 = vpack.c.bf16 %v1592_v46, %v1591_v45 }
 0x7f1   :  { %v1945_v41 = vpop.eup %1944 }
 0x7f2   :  { %v1117_v43 = vmul.f32 %v1945_v41, %v2289_v57 }
 0x7f4   :  { %v1118_v47 = vadd.f32 %v1117_v43, %v1112_v42 }
 0x7f6   :  { %v2377_v48 = vsel %vm1124_vm8, %v2289_v57, %v1118_v47  ;;  %v1917_v57 = vpack.c.bf16 %v1599_v56, %v1598_v55 }
 0x7f7   :  { %v1137_v51 = vmul.f32 %v1135_v44, %v2377_v48 }
 0x7f8   :  { %1918 = vmatpush3.bf16.msra.mxu1 %v1917_v57 }
 0x7f9   :  { %1809 = vmatmul.mubr.msk.f32.vlgmr.msra.gmra.mrb[10].mxu0 %vm58_vm1, %v1137_v51  ;;  %1919 = vmatprep.subr.bf16.mxu1 %v1998_v3 }
 0x7fa   :  { %1912 = vmatpush3.bf16.msra.mxu0 %v1911_v50  ;;  %1819 = vmatprep.mubr.msk.f32.mxu0 %vm1999_vm0, %v2000_v5 }
 0x7fb   :  { %1913 = vmatprep.subr.bf16.mxu0 %v1998_v3 }
 0x7fc   :  { %1921 = vmatpush3.bf16.msra.mxu1 %v1920_v7 }
 0x7fe   :  { %1915 = vmatpush3.bf16.msra.mxu0 %v1914_v53 }
 0x7ff   :  { %1922 = vmatprep.subr.bf16.mxu0 %v1998_v3 }
 0x8cc   :  { %v1218_v61 = vpop.f32.mrb[10].mxu0 }
 0x8cd   :  { %v1219_v62 = vadd.f32 %v1589_v58, %v1218_v61  ;;  %v1810_v63 = vpop.f32.mrb[11].mxu0 }
 0x8cf   :  { %v1222_v1 = vmax.f32 %v1219_v62, 0.0 }
 0x8d1   :  { %1820 = vmatmul.mubr.msk.f32.vlgmr.msra.gmra.mrb[12].mxu0 %vm144_vm2, %v1222_v1 }
 0x8d2   :  { %1924 = vmatpush3.bf16.msra.mxu0 %v1923_v0  ;;  %1841 = vmatprep.mubr.msk.f32.mxu0 %vm1999_vm0, %v2000_v5  ;;  %v1926_v5 = vpack.c.bf16 %v1608_v9, %v1607_v6 }
 0x8d3   :  { %1925 = vmatprep.subr.bf16.mxu0 %v1998_v3  ;;  %v1596_v3 = vld [vmem:[%s2478_s5 + $0x3] ss:$0 sm:$0xff]  ;;  %s2002_s5 = smov [#allocation4]  }
 0x8d4   :  { %s1511_s8 = sshll.u32 %s2002_s5, 4  ;;  %s1512_s8 = int_to_ptr.vmem [resolvable:$true] %s1511_s8 }
 0x8d5   :  { %s1950_s7 = scalar_lea.vmem %s1512_s8, 128  ;;  %p1955_p1 = scmp.lt.s32.totalorder %s1512_s8, %s1512_s8 }
 0x8d6   :  { %1927 = vmatpush3.bf16.msra.mxu0 %v1926_v5  ;;  %p1951_p0 = scmp.ne.s32.totalorder %s1512_s8, %s1950_s7  ;;  %p1956_p2 = scmp.lt.s32.totalorder %s1950_s7, %s1950_s7 }
 0x8d8   :  { %p1957_p3 = por %p1956_p2, %p1955_p1 }
 0x8da   :  { %p1958_p4 = pnand %p1957_p3, %p1951_p0 }
 0x9a4   :  { %v1305_v10 = vpop.f32.mrb[12].mxu0 }
 0x9a5   :  { %v1306_v11 = vadd.f32 %v1596_v3, %v1305_v10  ;;  %v1821_v12 = vpop.f32.mrb[13].mxu0 }
 0x9a7   :  { %v1309_v13 = vmax.f32 %v1306_v11, 0.0 }
 0x9a9   :  { %1831 = vmatmul.mubr.msk.f32.vlgmr.msra.gmra.mrb[14].mxu1 %vm144_vm2, %v1309_v13  ;;  %1842 = vmatmul.mubr.msk.f32.vlgmr.msra.gmra.mrb[14].mxu0 %vm144_vm2, %v1309_v13 }
 0xa7c   :  { %v1392_v15 = vpop.f32.mrb[14].mxu1  ;;  %v1476_v16 = vpop.f32.mrb[14].mxu0 }
 0xa7d   :  { %v1393_v17 = vadd.f32 %v1603_v14, %v1392_v15  ;;  %v1832_v18 = vpop.f32.mrb[15].mxu1  ;;  %v1843_v19 = vpop.f32.mrb[15].mxu0 }
 0xa7f   :  { %1946 = vtanh.f32 %v1393_v17 }
 0xa89   :  { %v1947_v23 = vpop.eup %1946 }
 0xa8a   :  { %v1480_v24 = vmul.f32 1.442695, %v1947_v23  ;;  %v1491_v25 = vsel %vm2433_vm10, 0.0, %v1947_v23 }
 0xa8b   :  { %v1492_v26 = vadd.f32 %v1491_v25, %v2360_v38 }
 0xa8c   :  { %1948 = vpow2.f32 %v1480_v24 }
 0xa8d   :  { %1494 = vst.msk [vmem:[#allocation4] sm:$0xff] %vm58_vm1, %v1492_v26 }
 0xa8e   :  { %1961 = shalt.err (!%p1958_p4)
}
 0xa8f   :  { %s1962_s24 = scalar_lea.hbm %s2484_s11, 128 }
 0xa90   :  { %p1963_p5 = scmp.ne.s32.totalorder %s2484_s11, %s1962_s24  ;;  %p1966_p6 = scmp.lt.u32.totalorder %s1962_s24, %s2484_s11 }
 0xa92   :  { %p1968_p7 = pnand %p1966_p6, %p1963_p5 }
 0xa94   :  { %1971 = shalt.err (!%p1968_p7)
}
 0xa95   :  { %1514 = dma.vmem_to_hbm [thread:$0]  %s1512_s8, 128, %s2484_s11, [#allocation5]   ;;  %v1610_v8 = vld [vmem:[%s2482_s9 + $0x3] ss:$0 sm:$0xff] }
 0xa96   :  { %v1949_v49 = vpop.eup %1948  ;;  %v1477_v27 = vadd.f32 %v1610_v8, %v1476_v16  ;;  %s2003_s12 = smov [#allocation2]  }
 0xa97   :  { %v1482_v28 = vmul.f32 %v1949_v49, %v2377_v48  ;;  %s1501_s13 = sshll.u32 %s2003_s12, 4  ;;  %s1502_s13 = int_to_ptr.vmem [resolvable:$true] %s1501_s13 }
 0xa98   :  { %s1972_s3 = scalar_lea.vmem %s1502_s13, 128  ;;  %p1977_p9 = scmp.lt.s32.totalorder %s1502_s13, %s1502_s13 }
 0xa99   :  { %v1483_v29 = vadd.f32 %v1482_v28, %v1477_v27  ;;  %p1973_p8 = scmp.ne.s32.totalorder %s1502_s13, %s1972_s3  ;;  %p1978_p10 = scmp.lt.s32.totalorder %s1972_s3, %s1972_s3 }
 0xa9b   :  { %v1490_v30 = vsel %vm2433_vm10, %v2377_v48, %v1483_v29  ;;  %p1979_p11 = por %p1978_p10, %p1977_p9 }
 0xa9c   :  { %1493 = vst.msk [vmem:[#allocation2] sm:$0xff] %vm58_vm1, %v1490_v30 }
 0xa9d   :  { %p1980_p12 = pnand %p1979_p11, %p1973_p8 }
 0xa9f   :  { %1983 = shalt.err (!%p1980_p12)
}
 0xaa0   :  { %s1984_s14 = scalar_lea.hbm %s2483_s10, 128 }
 0xaa1   :  { %p1985_p13 = scmp.ne.s32.totalorder %s2483_s10, %s1984_s14  ;;  %p1988_p0 = scmp.lt.u32.totalorder %s1984_s14, %s2483_s10 }
 0xaa3   :  { %p1990_p1 = pnand %p1988_p0, %p1985_p13 }
 0xaa5   :  { %1993 = shalt.err (!%p1990_p1)
}
 0xaa6   :  { %1504 = dma.vmem_to_hbm [thread:$0]  %s1502_s13, 128, %s2483_s10, [#allocation3]  }
 0xaa7   :  { %1994 = dma.done.wait [#allocation3], 128  }
 0xaa8   :  { %1995 = vsyncadd [#allocation3], 4294967168 }
 0xaa9   :  { %1996 = dma.done.wait [#allocation5], 128  }
 0xaaa   :  { %1997 = vsyncadd [#allocation5], 4294967168 }
 0xaab   :  { %1521 = vsyncpa [#allocation3], 1 }
 0xaac   :  { %1522 = vsyncpa [#allocation5], 1 }

</bundles_post_ra>
